<compile_context>
chip_gen: v7x
topology: tpu7x:2x2x1
jax: 0.10.0
libtpu: 0.0.40
codegen_flags: <defaults>
</compile_context>

<pallas_src>
from collections import OrderedDict
from functools import partial

import numpy as np
import jax
import jax.numpy as jnp
from jax.experimental import pallas as pl
from jax.experimental.pallas import tpu as pltpu


def make_interpolation_weights(output_grid, input_grid):
    """Port of the torch helper: nearest-two-point linear interp weights."""
    input_grid = np.asarray(input_grid, dtype=np.float32)
    output_grid = np.asarray(output_grid, dtype=np.float32)
    dist = np.abs(input_grid[None, :] - output_grid[:, None])  # (n_out, n_in)
    w = np.zeros_like(dist)
    for k in range(dist.shape[0]):
        order = np.argsort(dist[k], kind="stable")
        i, j = int(order[0]), int(order[1])
        vi, vj = dist[k, i], dist[k, j]
        w[k, i] = vj / (vi + vj)
        w[k, j] = vi / (vi + vj)
    return w


def _interp_kernel(x_ref, w_ref, o_ref, *, is_log):
    # x_ref block: (n_in, tl)  [batch / variable-concat on the lane axis]
    # w_ref      : (n_out, n_in) — constant index_map, stays VMEM-resident.
    xv = x_ref[...]
    if is_log:
        xv = jnp.log(xv)
    y = jnp.dot(w_ref[...], xv, preferred_element_type=jnp.float32)  # (n_out, tl)
    if is_log:
        y = jnp.exp(y)
    o_ref[...] = y.astype(o_ref.dtype)


def _pick_lane_tile(L):
    # Lane tile must be a multiple of 128 when tiling, else use the full extent.
    for t in (2048, 1024, 512, 256, 128):
        if L % t == 0:
            return t
    return L


def interpolate_group(x_cols, weight, *, is_log):
    """x_cols: (n_in, L) f32 with L = n_vars*B on the lane axis.
    weight: (n_out, n_in) f32.  Returns (n_out, L) f32 = [exp∘] W @ [log] x."""
    n_in, L = x_cols.shape
    n_out = weight.shape[0]
    tl = _pick_lane_tile(L)
    grid = (L // tl,)
    return pl.pallas_call(
        partial(_interp_kernel, is_log=is_log),
        out_shape=jax.ShapeDtypeStruct((n_out, L), jnp.float32),
        grid=grid,
        in_specs=[
            pl.BlockSpec((n_in, tl), lambda j: (0, j)),
            pl.BlockSpec((n_out, n_in), lambda j: (0, 0)),
        ],
        out_specs=pl.BlockSpec((n_out, tl), lambda j: (0, j)),
        compiler_params=pltpu.CompilerParams(
            dimension_semantics=("parallel",),
            vmem_limit_bytes=64 << 20,
        ),
    )(x_cols, weight)


class InterpolateGrid1D:
    log_linear_vars = ("Q",)

    def __init__(self, *, input_grid=None, output_grid=None,
                 input_grid_index=None, output_grid_index=None):
        # deterministic "parameter": the interpolation weight matrix (n_out, n_in)
        self.weight = jnp.asarray(
            make_interpolation_weights(output_grid, input_grid), dtype=jnp.float32)
        self.input_grid_index = input_grid_index
        if output_grid_index is None:
            n_levels = len(output_grid)
            output_grid_index = OrderedDict()
            s = 0
            for k, v in input_grid_index.items():
                var_size = v[1] - v[0]
                e = s + n_levels if var_size > 1 else s + 1
                output_grid_index[k] = [s, e]
                s = e
        self.output_grid_index = output_grid_index

    def __call__(self, x):
        squeeze = x.ndim == 1
        if squeeze:
            x = x[None, ...]
        B = x.shape[0]
        n_out, n_in = self.weight.shape

        # Group multi-level variables: linear vs log (Q). Scalars pass through.
        lin_keys, log_keys = [], []
        for k in self.output_grid_index.keys():
            s, e = self.input_grid_index[k]
            if e - s > 1:
                assert e - s == n_in, (
                    f"variable {k!r} has {e - s} levels, expected {n_in}")
                (log_keys if k in self.log_linear_vars else lin_keys).append(k)

        results = {}  # key -> (B, n_out) f32

        def run_group(keys, is_log):
            if not keys:
                return
            # Lay the batch (and all vars of the group) on the lane axis:
            # (n_in, n_keys*B).  One kernel call / one matmul per group.
            cols = jnp.concatenate(
                [x[:, self.input_grid_index[k][0]:self.input_grid_index[k][1]].T
                 for k in keys], axis=1).astype(jnp.float32)
            y = interpolate_group(cols, self.weight, is_log=is_log)  # (n_out, K*B)
            y = y.reshape(n_out, len(keys), B).transpose(1, 2, 0)    # (K, B, n_out)
            for i, k in enumerate(keys):
                results[k] = y[i]

        run_group(lin_keys, is_log=False)
        run_group(log_keys, is_log=True)

        # Assemble final concatenated output in output_grid_index order.
        # TODO(synk): for very large B the final transpose/concat could be fused
        # into the kernel's out_spec to avoid an extra HBM round trip.
        out = []
        for k in self.output_grid_index.keys():
            s, e = self.input_grid_index[k]
            if e - s == 1:
                out.append(x[:, s:e])
            else:
                out.append(results[k].astype(x.dtype))
        out = jnp.concatenate(out, axis=-1)
        if squeeze:
            out = out[0]
        return out


if __name__ == "__main__":
    n_in, n_out, B = 16, 8, 4
    input_grid = np.linspace(0.0, 1.0, n_in).tolist()
    output_grid = np.linspace(0.05, 0.95, n_out).tolist()
    # 'T' and 'Q' are vertical profiles (16 levels), 'PS' is a surface scalar.
    input_grid_index = OrderedDict([("T", [0, 16]), ("Q", [16, 32]), ("PS", [32, 33])])

    mod = InterpolateGrid1D(
        input_grid=input_grid,
        output_grid=output_grid,
        input_grid_index=input_grid_index,
    )

    key = jax.random.PRNGKey(0)
    x = jax.random.uniform(key, (B, 33), dtype=jnp.float32, minval=0.5, maxval=2.0)

    y = mod(x)
    y = jax.block_until_ready(y)

    # Pure-JAX reference for sanity.
    W = mod.weight
    ref = jnp.concatenate(
        [
            x[:, 0:16] @ W.T,                      # T : linear interp
            jnp.exp(jnp.log(x[:, 16:32]) @ W.T),   # Q : log-linear interp
            x[:, 32:33],                           # PS: pass-through
        ],
        axis=-1,
    )
    assert y.shape == (B, 17), y.shape
    np.testing.assert_allclose(np.asarray(y), np.asarray(ref), rtol=1e-5, atol=1e-5)

    # Also check the 1-D (squeezed) path the torch module supports.
    y1 = jax.block_until_ready(mod(x[0]))
    np.testing.assert_allclose(np.asarray(y1), np.asarray(ref[0]), rtol=1e-5, atol=1e-5)

    print("KERNEL_OK")
</pallas_src>

<mosaic_0001>
module attributes {stable_mosaic.version = 11 : i64} {
  func.func @_interp_kernel(%arg0: i32, %arg1: memref<16x4xf32, #tpu.memory_space<vmem>>, %arg2: memref<8x16xf32, #tpu.memory_space<vmem>>, %arg3: memref<8x4xf32, #tpu.memory_space<vmem>>) attributes {dimension_semantics = [#tpu.dimension_semantics<parallel>], iteration_bounds = array<i64: 1>, scalar_prefetch = 0 : i64, scratch_operands = 0 : i64, tpu.core_type = #tpu.core_type<tc>, window_params = [{transform_indices = @transform_0, window_bounds = array<i64: 16, 4>}, {pipeline_mode = #tpu.pipeline_mode<synchronous>, transform_indices = @transform_1, window_bounds = array<i64: 8, 16>}, {transform_indices = @transform_2, window_bounds = array<i64: 8, 4>}]} {
    %c0 = arith.constant 0 : index
    %c0_0 = arith.constant 0 : index
    %0 = vector.load %arg1[%c0, %c0_0] : memref<16x4xf32, #tpu.memory_space<vmem>>, vector<16x4xf32>
    %c0_1 = arith.constant 0 : index
    %c0_2 = arith.constant 0 : index
    %1 = vector.load %arg2[%c0_1, %c0_2] : memref<8x16xf32, #tpu.memory_space<vmem>>, vector<8x16xf32>
    %cst = arith.constant dense<0.000000e+00> : vector<8x4xf32>
    %2 = tpu.matmul %1, %0, %cst {dimension_numbers = #tpu.dot_dimension_numbers<[1], [0], [0], [1], [0, 0, 1, 1], [], []>} : vector<8x16xf32>, vector<16x4xf32>, vector<8x4xf32> -> vector<8x4xf32>
    %c0_3 = arith.constant 0 : index
    %c0_4 = arith.constant 0 : index
    %3 = vector.load %arg3[%c0_3, %c0_4] : memref<8x4xf32, #tpu.memory_space<vmem>>, vector<8x4xf32>
    tpu.vector_store %arg3[%c0_3, %c0_4], %2 {strides = array<i32>} : memref<8x4xf32, #tpu.memory_space<vmem>>, vector<8x4xf32>,
    return
  }
  func.func @transform_0(%arg0: i32) -> (i32, i32) {
    %c0_i32 = arith.constant 0 : i32
    %c0_i32_0 = arith.constant 0 : i32
    return %c0_i32, %arg0 : i32, i32
  }
  func.func @transform_1(%arg0: i32) -> (i32, i32) {
    %c0_i32 = arith.constant 0 : i32
    %c0_i32_0 = arith.constant 0 : i32
    %c0_i32_1 = arith.constant 0 : i32
    return %c0_i32, %c0_i32_0 : i32, i32
  }
  func.func @transform_2(%arg0: i32) -> (i32, i32) {
    %c0_i32 = arith.constant 0 : i32
    %c0_i32_0 = arith.constant 0 : i32
    return %c0_i32, %arg0 : i32, i32
  }
}

</mosaic_0001>

<bundles_post_ra>
// kernel: tpu_custom_call.1
= control target key start
LH: loop header
LB: loop body
LE: loop exit
PB: predicated region body
PF: predicated region fallthrough
CT: control target
= control target key end

     0   :  { %7 = vsyncpa [#allocation3], 0  ;;  %s286_s0 = inlined_call_operand.hbm [shape: f32[16,4], index: 0, kind: input, shape index: {}]   ;;  %s287_s1 = inlined_call_operand.hbm [shape: f32[8,16], index: 1, kind: input, shape index: {}]   ;;  %s288_s2 = inlined_call_operand.hbm [shape: f32[8,4], index: 2, kind: output, shape index: {}]  }
   0x1   :  { %8 = vsyncpa [#allocation6], 0 }
   0x2   :  { %9 = vsyncpa [#allocation4], 0  ;;  %s227_s9 = smov [#allocation2]   ;;  %s155_s13 = scalar_lea.hbm %s286_s0, 256 }
   0x3   :  { %s15_s10 = sshll.u32 %s227_s9, 4  ;;  %p156_p0 = scmp.ne.s32.totalorder %s286_s0, %s155_s13  ;;  %s16_s10 = int_to_ptr.vmem [resolvable:$true] %s15_s10 }
   0x4   :  { %p159_p1 = scmp.lt.u32.totalorder %s155_s13, %s286_s0 }
   0x6   :  { %p161_p2 = pnand %p159_p1, %p156_p0 }
   0x8   :  { %164 = shalt.err (!%p161_p2)
}
   0x9   :  { %s165_s18 = scalar_lea.vmem %s16_s10, 256  ;;  %p170_p4 = scmp.lt.s32.totalorder %s16_s10, %s16_s10 }
   0xa   :  { %p166_p3 = scmp.ne.s32.totalorder %s16_s10, %s165_s18  ;;  %p171_p5 = scmp.lt.s32.totalorder %s165_s18, %s165_s18 }
   0xc   :  { %p172_p6 = por %p171_p5, %p170_p4 }
   0xe   :  { %p173_p7 = pnand %p172_p6, %p166_p3 }
  0x10   :  { %176 = shalt.err (!%p173_p7)
}
  0x11   :  { %s228_s19 = smov 128   ;;  %s229_s20 = smov 8  }
  0x12   :  { %21 = dma.hbm_to_vmem [thread:$0]  %s286_s0, 256, %s16_s10, [#allocation3], %s228_s19, %s228_s19, %s229_s20  }
  0x13   :  { %s230_s23 = smov [#allocation5]   ;;  %s177_s27 = scalar_lea.hbm %s287_s1, 128 }
  0x14   :  { %s28_s24 = sshll.u32 %s230_s23, 4  ;;  %p178_p8 = scmp.ne.s32.totalorder %s287_s1, %s177_s27  ;;  %s29_s24 = int_to_ptr.vmem [resolvable:$true] %s28_s24 }
  0x15   :  { %p181_p9 = scmp.lt.u32.totalorder %s177_s27, %s287_s1 }
  0x17   :  { %p183_p10 = pnand %p181_p9, %p178_p8 }
  0x19   :  { %186 = shalt.err (!%p183_p10)
}
  0x1a   :  { %s187_s4 = scalar_lea.vmem %s29_s24, 128  ;;  %p192_p12 = scmp.lt.s32.totalorder %s29_s24, %s29_s24 }
  0x1b   :  { %p188_p11 = scmp.ne.s32.totalorder %s29_s24, %s187_s4  ;;  %p193_p13 = scmp.lt.s32.totalorder %s187_s4, %s187_s4 }
  0x1d   :  { %p194_p0 = por %p193_p13, %p192_p12 }
  0x1f   :  { %p195_p1 = pnand %p194_p0, %p188_p11 }
  0x21   :  { %198 = shalt.err (!%p195_p1)
}
  0x22   :  { %31 = dma.hbm_to_vmem [thread:$0]  %s287_s1, 128, %s29_s24, [#allocation6]  }
  0x23   :  { %221 = dma.done.wait [#allocation3], 256  }
  0x24   :  { %222 = vsyncadd [#allocation3], 4294967040 }
  0x25   :  { %223 = dma.done.wait [#allocation6], 128  }
  0x26   :  { %224 = vsyncadd [#allocation6], 4294967168  ;;  %v231_v0 = vmov 0.0|0.0   ;;  %vm232_vm0 = vmmov 0   ;;  %v233_v1 = vmov 0.0   ;;  %v38_v2 = vld [vmem:[#allocation2] sm:$0xff] }
  0x27   :  { %144 = vmatprep.subr.bf16.mxu0 %v231_v0  ;;  %141 = vmatprep.mubr.msk.f32.mxu0 %vm232_vm0, %v233_v1  ;;  %v39_v3 = vld [vmem:[#allocation2 + $0x8] sm:$0xff]  ;;  %v40_v5 = vld [vmem:[#allocation5] sm:$0xff]  ;;  %vm41_vm1 = vcmask 130048   ;;  %s234_s6 = smov [#allocation7]   ;;  %vm115_vm2 = vcmask 31744  }
  0x28   :  { %v145_v4 = vpack.c.bf16 %v39_v3, %v38_v2  ;;  %s123_s7 = sshll.u32 %s234_s6, 4  ;;  %s124_s7 = int_to_ptr.vmem [resolvable:$true] %s123_s7 }
  0x29   :  { %s199_s1 = scalar_lea.vmem %s124_s7, 128  ;;  %p204_p3 = scmp.lt.s32.totalorder %s124_s7, %s124_s7 }
  0x2a   :  { %146 = vmatpush3.bf16.msra.mxu0 %v145_v4  ;;  %p200_p2 = scmp.ne.s32.totalorder %s124_s7, %s199_s1  ;;  %p205_p4 = scmp.lt.s32.totalorder %s199_s1, %s199_s1 }
  0x2c   :  { %p206_p5 = por %p205_p4, %p204_p3 }
  0x2d   :  { %142 = vmatmul.mubr.msk.f32.vlgmr.msra.gmra.mrb[0].mxu0 %vm41_vm1, %v40_v5 }
  0x2e   :  { %p207_p6 = pnand %p206_p5, %p200_p2 }
 0x100   :  { %v111_v6 = vpop.f32.mrb[0].mxu0 }
 0x101   :  { %v143_v7 = vpop.f32.mrb[1].mxu0  ;;  %116 = vst.msk [vmem:[#allocation7] sm:$0xff] %vm115_vm2, %v111_v6 }
 0x102   :  { %210 = shalt.err (!%p207_p6)
}
 0x103   :  { %s211_s10 = scalar_lea.hbm %s288_s2, 128 }
 0x104   :  { %p212_p7 = scmp.ne.s32.totalorder %s288_s2, %s211_s10  ;;  %p215_p8 = scmp.lt.u32.totalorder %s211_s10, %s288_s2 }
 0x106   :  { %p217_p9 = pnand %p215_p8, %p212_p7 }
 0x108   :  { %220 = shalt.err (!%p217_p9)
}
 0x109   :  { %126 = dma.vmem_to_hbm [thread:$0]  %s124_s7, 128, %s288_s2, [#allocation4]  }
 0x10a   :  { %225 = dma.done.wait [#allocation4], 128  }
 0x10b   :  { %226 = vsyncadd [#allocation4], 4294967168 }
 0x10c   :  { %130 = vsyncpa [#allocation3], 1 }
 0x10d   :  { %131 = vsyncpa [#allocation6], 1 }
 0x10e   :  { %132 = vsyncpa [#allocation4], 1 }

</bundles_post_ra>
